<compile_context>
chip_gen: v6e
topology: v6e:2x2x1
jax: 0.10.0
libtpu: 0.0.40
codegen_flags: <defaults>
</compile_context>

<pallas_src>
import math

import jax
import jax.numpy as jnp
import numpy as np
from jax.experimental import pallas as pl
from jax.experimental.pallas import tpu as pltpu


def _make_dpb_kernel(n, dim, heads, depth, log_distance, norm):
    """Kernel refs = (w_stack, vecs, target_idx, out).

    w_stack : (depth, dim, dim)  hidden weights (PyTorch (out, in) layout); the
              last slab is the output projection zero-padded to (dim, dim).
    vecs    : (dim, K) columns = [W1, b1, (g1, be1)]
              + per hidden layer [b, (g, be)] + [bo padded to dim].
    target  : (1, n*n) int32, flattened gather index i - j + n - 1.
    out     : (heads, n*n) float32.
    """
    P = 2 * n - 1

    def kernel(w_ref, v_ref, tgt_ref, out_ref):
        # Relative positions -n+1 .. n-1 on the lane axis: (1, P). No input DMA.
        pos = (jax.lax.broadcasted_iota(jnp.int32, (1, P), 1).astype(jnp.float32)
               - float(n - 1))
        if log_distance:
            sign = jnp.where(pos > 0.0, 1.0, jnp.where(pos < 0.0, -1.0, 0.0))
            pos = sign * jnp.log(jnp.abs(pos) + 1.0)

        def silu(x):
            # x * sigmoid(x); exp goes to the EUP slot.
            return x / (1.0 + jnp.exp(-x))

        def layer_norm(x, g, b):
            # Features live on axis 0 (sublanes) in this transposed layout.
            mu = jnp.mean(x, axis=0, keepdims=True)
            var = jnp.mean((x - mu) ** 2, axis=0, keepdims=True)
            return (x - mu) * jax.lax.rsqrt(var + 1e-5) * g + b

        # ---- layer 0: Linear(1, dim) as a VPU rank-1 broadcast (no K=1 MXU op).
        w1 = v_ref[:, 0:1]                      # (dim, 1)
        b1 = v_ref[:, 1:2]                      # (dim, 1)
        x = w1 * pos + b1                       # (dim, P)
        col = 2
        if norm:
            x = layer_norm(x, v_ref[:, 2:3], v_ref[:, 3:4])
            col = 4
        x = silu(x)

        # ---- hidden layers: Linear(dim, dim) on the MXU, transposed layout.
        for l in range(depth - 1):
            W = w_ref[l]                        # (dim, dim) PyTorch (out, in)
            b = v_ref[:, col:col + 1]           # (dim, 1)
            col += 1
            x = jnp.dot(W, x, preferred_element_type=jnp.float32) + b
            if norm:
                x = layer_norm(x, v_ref[:, col:col + 1], v_ref[:, col + 1:col + 2])
                col += 2
            x = silu(x)

        # ---- output projection: Linear(dim, heads) -> (heads, P).
        Wo = w_ref[depth - 1][:heads, :]        # (heads, dim)
        bo = v_ref[:heads, col:col + 1]         # (heads, 1)
        out_h = jnp.dot(Wo, x, preferred_element_type=jnp.float32) + bo

        # ---- fused gather + transpose: Toeplitz one-hot matmul on the MXU.
        # bias[h, i*n + j] = out_h[h, i - j + n - 1]
        p_iota = jax.lax.broadcasted_iota(jnp.int32, (P, n * n), 0)
        onehot = (p_iota == tgt_ref[...]).astype(jnp.float32)      # (P, n*n)
        out_ref[...] = jnp.dot(out_h, onehot,
                               preferred_element_type=jnp.float32)

    return kernel


def _init_params(key, dim, heads, depth, norm):
    """Deterministic params in PyTorch nn.Linear layout (W: (out, in), b: (out,))."""
    layers = []
    in_f = 1
    for _ in range(depth):
        key, kw, kb = jax.random.split(key, 3)
        bound = 1.0 / math.sqrt(in_f)
        entry = {
            "W": jax.random.uniform(kw, (dim, in_f), jnp.float32, -bound, bound),
            "b": jax.random.uniform(kb, (dim,), jnp.float32, -bound, bound),
        }
        if norm:
            key, kg, ke = jax.random.split(key, 3)
            entry["g"] = jax.random.uniform(kg, (dim,), jnp.float32, 0.5, 1.5)
            entry["beta"] = jax.random.uniform(ke, (dim,), jnp.float32, -0.5, 0.5)
        layers.append(entry)
        in_f = dim
    key, kw, kb = jax.random.split(key, 3)
    bound = 1.0 / math.sqrt(dim)
    Wo = jax.random.uniform(kw, (heads, dim), jnp.float32, -bound, bound)
    bo = jax.random.uniform(kb, (heads,), jnp.float32, -bound, bound)
    return {"layers": layers, "Wo": Wo, "bo": bo}


def _pack_params(params, *, dim, heads, depth, norm):
    """Collapse all parameters into 2 arrays (2 input DMAs)."""
    assert heads <= dim
    layers, Wo, bo = params["layers"], params["Wo"], params["bo"]

    cols = [layers[0]["W"][:, 0], layers[0]["b"]]
    if norm:
        cols += [layers[0]["g"], layers[0]["beta"]]
    slabs = []
    for l in range(1, depth):
        cols.append(layers[l]["b"])
        if norm:
            cols += [layers[l]["g"], layers[l]["beta"]]
        slabs.append(layers[l]["W"])
    cols.append(jnp.zeros((dim,), jnp.float32).at[:heads].set(bo))
    slabs.append(jnp.zeros((dim, dim), jnp.float32).at[:heads, :].set(Wo))

    vecs = jnp.stack(cols, axis=1)        # (dim, K)
    w_stack = jnp.stack(slabs, axis=0)    # (depth, dim, dim)
    return w_stack, vecs


def dynamic_position_bias(n, params, *, dim, heads, depth,
                          log_distance=False, norm=False):
    """Returns bias of shape (heads, n, n), matching PyTorch forward(i=j=n)."""
    P = 2 * n - 1
    w_stack, vecs = _pack_params(params, dim=dim, heads=heads, depth=depth, norm=norm)

    idx = np.arange(n)[:, None] - np.arange(n)[None, :] + (n - 1)   # (n, n)
    target = jnp.asarray(idx.reshape(1, n * n), dtype=jnp.int32)

    kernel = _make_dpb_kernel(n, dim, heads, depth, log_distance, norm)

    flops = int(2 * ((depth - 1) * dim * dim * P + heads * dim * P
                     + heads * P * n * n) + 8 * depth * dim * P)
    transcendentals = int(depth * dim * P)
    bytes_accessed = int(4 * (w_stack.size + vecs.size + target.size
                              + heads * n * n))

    vmem = pl.BlockSpec(memory_space=pltpu.MemorySpace.VMEM)
    out = pl.pallas_call(
        kernel,
        out_shape=jax.ShapeDtypeStruct((heads, n * n), jnp.float32),
        in_specs=[vmem, vmem, vmem],
        out_specs=vmem,
        cost_estimate=pl.CostEstimate(flops=flops,
                                      transcendentals=transcendentals,
                                      bytes_accessed=bytes_accessed),
    )(w_stack, vecs, target)

    # TODO(synk): for large n, grid over i-tiles (axis marked "parallel" for
    # v7x's 2 TensorCores, tile sized against 64 MiB VMEM) and build each tile
    # from reversed lane slices instead of the O(P*n^2) one-hot matmul.
    return out.reshape(heads, n, n)   # free row-major reshape


def _reference(n, params, *, depth, log_distance=False, norm=False):
    """Pure-JAX mirror of the PyTorch forward for verification."""
    P = 2 * n - 1
    x = jnp.arange(-n + 1, n, dtype=jnp.float32).reshape(P, 1)
    if log_distance:
        x = jnp.sign(x) * jnp.log(jnp.abs(x) + 1.0)
    for layer in params["layers"]:
        x = x @ layer["W"].T + layer["b"]
        if norm:
            mu = jnp.mean(x, -1, keepdims=True)
            var = jnp.mean((x - mu) ** 2, -1, keepdims=True)
            x = (x - mu) * jax.lax.rsqrt(var + 1e-5) * layer["g"] + layer["beta"]
        x = x * jax.nn.sigmoid(x)
    x = x @ params["Wo"].T + params["bo"]
    idx = jnp.arange(n)[:, None] - jnp.arange(n)[None, :] + (n - 1)
    return jnp.transpose(x[idx], (2, 0, 1))


if __name__ == "__main__":
    configs = [
        dict(n=8, dim=32, heads=4, depth=2, log_distance=False, norm=False),
        dict(n=16, dim=32, heads=8, depth=3, log_distance=True, norm=True),
    ]
    for cfg in configs:
        key = jax.random.PRNGKey(0)
        params = _init_params(key, cfg["dim"], cfg["heads"], cfg["depth"], cfg["norm"])

        bias = dynamic_position_bias(cfg["n"], params, dim=cfg["dim"],
                                     heads=cfg["heads"], depth=cfg["depth"],
                                     log_distance=cfg["log_distance"],
                                     norm=cfg["norm"])
        bias = jax.block_until_ready(bias)

        ref = _reference(cfg["n"], params, depth=cfg["depth"],
                         log_distance=cfg["log_distance"], norm=cfg["norm"])
        assert bias.shape == (cfg["heads"], cfg["n"], cfg["n"]), bias.shape
        np.testing.assert_allclose(np.asarray(bias), np.asarray(ref),
                                   rtol=1e-3, atol=1e-3)
    print("KERNEL_OK")
</pallas_src>

<mosaic_0001>
module attributes {stable_mosaic.version = 11 : i64} {
  func.func @kernel(%arg0: memref<2x32x32xf32, #tpu.memory_space<vmem>>, %arg1: memref<32x4xf32, #tpu.memory_space<vmem>>, %arg2: memref<1x64xi32, #tpu.memory_space<vmem>>, %arg3: memref<4x64xf32, #tpu.memory_space<vmem>>) attributes {dimension_semantics = [], scalar_prefetch = 0 : i64, scratch_operands = 0 : i64, tpu.core_type = #tpu.core_type<tc>} {
    %0 = tpu.iota {dimensions = array<i32: 1>} : vector<1x15xi32>
    %1 = arith.sitofp %0 : vector<1x15xi32> to vector<1x15xf32>
    %cst = arith.constant 7.000000e+00 : f32
    %2 = vector.broadcast %cst : f32 to vector<1x15xf32>
    %3 = arith.subf %1, %2 : vector<1x15xf32>
    %c0 = arith.constant 0 : index
    %c0_0 = arith.constant 0 : index
    %4 = vector.load %arg1[%c0, %c0_0] : memref<32x4xf32, #tpu.memory_space<vmem>>, vector<32x1xf32>
    %c0_1 = arith.constant 0 : index
    %c1 = arith.constant 1 : index
    %5 = vector.load %arg1[%c0_1, %c1] : memref<32x4xf32, #tpu.memory_space<vmem>>, vector<32x1xf32>
    %6 = vector.broadcast %4 : vector<32x1xf32> to vector<32x15xf32>
    %7 = vector.broadcast %3 : vector<1x15xf32> to vector<32x15xf32>
    %8 = arith.mulf %6, %7 : vector<32x15xf32>
    %9 = vector.broadcast %5 : vector<32x1xf32> to vector<32x15xf32>
    %10 = arith.addf %8, %9 : vector<32x15xf32>
    %cst_2 = arith.constant 0.000000e+00 : f32
    %11 = vector.broadcast %cst_2 : f32 to vector<32x15xf32>
    %12 = arith.subf %11, %10 : vector<32x15xf32>
    %13 = math.exp %12 : vector<32x15xf32>
    %cst_3 = arith.constant 1.000000e+00 : f32
    %14 = vector.broadcast %cst_3 : f32 to vector<32x15xf32>
    %15 = arith.addf %14, %13 : vector<32x15xf32>
    %16 = arith.divf %10, %15 : vector<32x15xf32>
    %c0_4 = arith.constant 0 : index
    %c0_5 = arith.constant 0 : index
    %c0_6 = arith.constant 0 : index
    %17 = vector.load %arg0[%c0_4, %c0_5, %c0_6] : memref<2x32x32xf32, #tpu.memory_space<vmem>>, vector<1x32x32xf32>
    %18 = vector.shape_cast %17 : vector<1x32x32xf32> to vector<32x32xf32>
    %c0_7 = arith.constant 0 : index
    %c2 = arith.constant 2 : index
    %19 = vector.load %arg1[%c0_7, %c2] : memref<32x4xf32, #tpu.memory_space<vmem>>, vector<32x1xf32>
    %cst_8 = arith.constant dense<0.000000e+00> : vector<32x15xf32>
    %20 = tpu.matmul %18, %16, %cst_8 {dimension_numbers = #tpu.dot_dimension_numbers<[1], [0], [0], [1], [0, 0, 1, 1], [], []>} : vector<32x32xf32>, vector<32x15xf32>, vector<32x15xf32> -> vector<32x15xf32>
    %21 = vector.broadcast %19 : vector<32x1xf32> to vector<32x15xf32>
    %22 = arith.addf %20, %21 : vector<32x15xf32>
    %cst_9 = arith.constant 0.000000e+00 : f32
    %23 = vector.broadcast %cst_9 : f32 to vector<32x15xf32>
    %24 = arith.subf %23, %22 : vector<32x15xf32>
    %25 = math.exp %24 : vector<32x15xf32>
    %cst_10 = arith.constant 1.000000e+00 : f32
    %26 = vector.broadcast %cst_10 : f32 to vector<32x15xf32>
    %27 = arith.addf %26, %25 : vector<32x15xf32>
    %28 = arith.divf %22, %27 : vector<32x15xf32>
    %c1_11 = arith.constant 1 : index
    %c0_12 = arith.constant 0 : index
    %c0_13 = arith.constant 0 : index
    %29 = vector.load %arg0[%c1_11, %c0_12, %c0_13] : memref<2x32x32xf32, #tpu.memory_space<vmem>>, vector<1x32x32xf32>
    %30 = vector.shape_cast %29 : vector<1x32x32xf32> to vector<32x32xf32>
    %31 = vector.extract_strided_slice %30 {offsets = [0, 0], sizes = [4, 32], strides = [1, 1]} : vector<32x32xf32> to vector<4x32xf32>
    %c0_14 = arith.constant 0 : index
    %c3 = arith.constant 3 : index
    %32 = vector.load %arg1[%c0_14, %c3] : memref<32x4xf32, #tpu.memory_space<vmem>>, vector<4x1xf32>
    %cst_15 = arith.constant dense<0.000000e+00> : vector<4x15xf32>
    %33 = tpu.matmul %31, %28, %cst_15 {dimension_numbers = #tpu.dot_dimension_numbers<[1], [0], [0], [1], [0, 0, 1, 1], [], []>} : vector<4x32xf32>, vector<32x15xf32>, vector<4x15xf32> -> vector<4x15xf32>
    %34 = vector.broadcast %32 : vector<4x1xf32> to vector<4x15xf32>
    %35 = arith.addf %33, %34 : vector<4x15xf32>
    %36 = tpu.iota {dimensions = array<i32: 0>} : vector<15x64xi32>
    %c0_16 = arith.constant 0 : index
    %c0_17 = arith.constant 0 : index
    %37 = vector.load %arg2[%c0_16, %c0_17] : memref<1x64xi32, #tpu.memory_space<vmem>>, vector<1x64xi32>
    %38 = vector.broadcast %37 : vector<1x64xi32> to vector<15x64xi32>
    %39 = arith.cmpi eq, %36, %38 : vector<15x64xi32>
    %40 = arith.extui %39 : vector<15x64xi1> to vector<15x64xi32>
    %41 = arith.sitofp %40 : vector<15x64xi32> to vector<15x64xf32>
    %cst_18 = arith.constant dense<0.000000e+00> : vector<4x64xf32>
    %42 = tpu.matmul %35, %41, %cst_18 {dimension_numbers = #tpu.dot_dimension_numbers<[1], [0], [0], [1], [0, 0, 1, 1], [], []>} : vector<4x15xf32>, vector<15x64xf32>, vector<4x64xf32> -> vector<4x64xf32>
    %c0_19 = arith.constant 0 : index
    %c0_20 = arith.constant 0 : index
    %43 = vector.load %arg3[%c0_19, %c0_20] : memref<4x64xf32, #tpu.memory_space<vmem>>, vector<4x64xf32>
    tpu.vector_store %arg3[%c0_19, %c0_20], %42 {strides = array<i32>} : memref<4x64xf32, #tpu.memory_space<vmem>>, vector<4x64xf32>,
    return
  }
}

</mosaic_0001>

<bundles_post_ra>
// kernel: tpu_custom_call.1
= control target key start
LH: loop header
LB: loop body
LE: loop exit
PB: predicated region body
PF: predicated region fallthrough
CT: control target
= control target key end

     0   :  { %8 = vsyncpa [#allocation3], 0  ;;  %s665_s0 = inlined_call_operand.hbm [shape: f32[2,32,32], index: 0, kind: input, shape index: {}]   ;;  %s666_s1 = inlined_call_operand.vmem [shape: f32[32,4], index: 1, kind: input, shape index: {}]   ;;  %s667_s2 = inlined_call_operand.vmem [shape: s32[1,64], index: 2, kind: input, shape index: {}]   ;;  %s668_s3 = inlined_call_operand.hbm [shape: f32[4,64], index: 3, kind: output, shape index: {}]  }
   0x1   :  { %9 = vsyncpa [#allocation4], 0  ;;  %s592_s12 = smov [#allocation2]  }
   0x2   :  { %s15_s13 = sshll.u32 %s592_s12, 4  ;;  %s16_s13 = int_to_ptr.vmem [resolvable:$true] %s15_s13 }
   0x3   :  { %s556_s14 = scalar_lea.vmem %s16_s13, 1024  ;;  %p561_p1 = scmp.lt.s32.totalorder %s16_s13, %s16_s13 }
   0x4   :  { %p557_p0 = scmp.ne.s32.totalorder %s16_s13, %s556_s14  ;;  %p562_p2 = scmp.lt.s32.totalorder %s556_s14, %s556_s14 }
   0x6   :  { %p563_p3 = por %p562_p2, %p561_p1 }
   0x8   :  { %p564_p4 = pnand %p563_p3, %p557_p0 }
   0xa   :  { %567 = shalt.err (!%p564_p4)
}
   0xb   :  { %s593_s15 = smov 128   ;;  %s594_s16 = smov 8  }
   0xc   :  { %21 = dma.hbm_to_vmem [thread:$0]  %s665_s0, 1024, %s16_s13, [#allocation3], %s593_s15, %s593_s15, %s594_s16  }
   0xd   :  { %588 = dma.done.wait [#allocation3], 1024  }
   0xe   :  { %589 = vsyncadd [#allocation3], 4294966272  ;;  %v595_v0 = vmov 1   ;;  %v596_v1 = vmov 0   ;;  %v36_v2 = vld [vmem:[%s666_s1 + $0x18] sm:$0xff]  ;;  %v35_v3 = vld [vmem:[%s666_s1 + $0x10] sm:$0xff]  ;;  %v29_v8 = vlaneseq }
   0xf   :  { %509 = vset.pattern.permute.xlu1 %v595_v0  ;;  %508 = vset.pattern.permute.xlu0 %v596_v1  ;;  %v34_v4 = vld [vmem:[%s666_s1 + $0x8] sm:$0xff]  ;;  %v33_v5 = vld [vmem:[%s666_s1] sm:$0xff]  ;;  %vm125_vm0 = vcmask 261120   ;;  %v597_v7 = vmov 2   ;;  %v107_v53 = vld [vmem:[#allocation2 + $0x10] sm:$0xff]  ;;  %v598_v55 = vmov 0.0  }
  0x10   :  { %74 = vperm.xlu1 %509, %v36_v2   ;;  %54 = vperm.xlu0 %508, %v36_v2   ;;  %v105_v6 = vld [vmem:[#allocation2] sm:$0xff]  ;;  %v30_v9 = vand.u32 127, %v29_v8  ;;  %v106_v52 = vld [vmem:[#allocation2 + $0x8] sm:$0xff]  ;;  %v108_v54 = vld [vmem:[#allocation2 + $0x18] sm:$0xff]  ;;  %vm599_vm1 = vmmov 0   ;;  %v600_v57 = vmov 3  }
  0x11   :  { %473 = vmatprep.mubr.msk.f32.mxu0 %vm125_vm0, %v105_v6  ;;  %479 = vmatprep.subr.mxu1 %v598_v55  ;;  %v249_v56 = vld [vmem:[%s666_s1] sm:$0xf]  ;;  %vm346_vm3 = vcmask 1046528   ;;  %vm342_vm5 = vcmask 121856   ;;  %vm420_vm6 = vcmask 519168  }
  0x12   :  { %v31_v10 = vcvt.s32.f32 %v30_v9  ;;  %487 = vmatprep.mubr.msk.f32.mxu1 %vm599_vm1, %v598_v55 }
  0x14   :  { %510 = vset.pattern.permute.xlu1 %v596_v1  ;;  %49 = vperm.xlu0 %508, %v35_v3   ;;  %v437_v11 = vadd.f32 -7.0, %v31_v10 }
  0x15   :  { %44 = vperm.xlu1 %510, %v34_v4  }
  0x18   :  { %511 = vset.pattern.permute.xlu0 %v595_v0 }
  0x19   :  { %70 = vperm.xlu0 %511, %v35_v3   ;;  %39 = vperm.xlu1 %510, %v33_v5  }
  0x1d   :  { %62 = vperm.xlu0 %511, %v33_v5   ;;  %512 = vset.pattern.permute.xlu1 %v595_v0 }
  0x1e   :  { %66 = vperm.xlu1 %512, %v34_v4  }
  0x21   :  { %514 = vset.pattern.permute.xlu0 %v597_v7 }
  0x22   :  { %513 = vset.pattern.permute.xlu1 %v597_v7  ;;  %118 = vperm.xlu0 %514, %v35_v3  }
  0x23   :  { %122 = vperm.xlu1 %513, %v36_v2  }
  0x26   :  { %515 = vset.pattern.permute.xlu0 %v600_v57 }
  0x27   :  { %114 = vperm.xlu1 %513, %v34_v4   ;;  %252 = vperm.xlu0 %515, %v249_v56  }
  0x2b   :  { %110 = vperm.xlu1 %513, %v33_v5  }
  0x8b   :  { %v75_v12 = vpop.permute.xlu1 %74  ;;  %v55_v13 = vpop.permute.xlu0 %54 }
  0x8c   :  { %v60_v14 = vmul.f32 %v437_v11, %v55_v13 }
  0x8e   :  { %v80_v15 = vadd.f32 %v75_v12, %v60_v14 }
  0x8f   :  { %v50_v16 = vpop.permute.xlu0 %49 }
  0x90   :  { %v84_v17 = vsub.f32 0.0, %v80_v15  ;;  %v45_v18 = vpop.permute.xlu1 %44  ;;  %v59_v20 = vmul.f32 %v437_v11, %v50_v16 }
  0x91   :  { %v58_v26 = vmul.f32 %v437_v11, %v45_v18 }
  0x92   :  { %v91_v19 = vmul.f32 1.442695, %v84_v17 }
  0x94   :  { %516 = vpow2.f32 %v91_v19  ;;  %v71_v21 = vpop.permute.xlu0 %70  ;;  %v40_v22 = vpop.permute.xlu1 %39 }
  0x95   :  { %v79_v23 = vadd.f32 %v71_v21, %v59_v20  ;;  %v57_v25 = vmul.f32 %v437_v11, %v40_v22 }
  0x97   :  { %v83_v24 = vsub.f32 0.0, %v79_v23 }
  0x98   :  { %v63_v27 = vpop.permute.xlu0 %62 }
  0x99   :  { %v89_v28 = vmul.f32 1.442695, %v83_v24  ;;  %v77_v29 = vadd.f32 %v63_v27, %v57_v25  ;;  %v67_v30 = vpop.permute.xlu1 %66 }
  0x9a   :  { %v78_v31 = vadd.f32 %v67_v30, %v58_v26 }
  0x9b   :  { %518 = vpow2.f32 %v89_v28  ;;  %v81_v32 = vsub.f32 0.0, %v77_v29 }
  0x9c   :  { %v82_v33 = vsub.f32 0.0, %v78_v31 }
  0x9d   :  { %v85_v34 = vmul.f32 1.442695, %v81_v32  ;;  %v119_v3 = vpop.permute.xlu0 %118 }
  0x9e   :  { %v87_v35 = vmul.f32 1.442695, %v82_v33  ;;  %v123_v58 = vpop.permute.xlu1 %122  ;;  %v248_v33 = vld [vmem:[#allocation2 + $0x20] sm:$0xff] }
  0x9f   :  { %520 = vpow2.f32 %v85_v34 }
  0xa0   :  { %522 = vpow2.f32 %v87_v35  ;;  %v601_v35 = vmov 1.0  }
  0xa1   :  { %v517_v36 = vpop.eup %516 }
  0xa2   :  { %v96_v37 = vadd.f32 1.0, %v517_v36  ;;  %v115_v59 = vpop.permute.xlu1 %114  ;;  %v253_v36 = vpop.permute.xlu0 %252 }
  0xa4   :  { %524 = vrcp.f32 %v96_v37 }
  0xa6   :  { %v111_v61 = vpop.permute.xlu1 %110 }
  0xa8   :  { %v519_v38 = vpop.eup %518 }
  0xa9   :  { %v95_v39 = vadd.f32 1.0, %v519_v38 }
  0xab   :  { %526 = vrcp.f32 %v95_v39 }
  0xac   :  { %v521_v40 = vpop.eup %520 }
  0xad   :  { %v523_v41 = vpop.eup %522  ;;  %v93_v42 = vadd.f32 1.0, %v521_v40 }
  0xae   :  { %v94_v43 = vadd.f32 1.0, %v523_v41 }
  0xaf   :  { %528 = vrcp.f32 %v93_v42 }
  0xb0   :  { %530 = vrcp.f32 %v94_v43 }
  0xb1   :  { %v525_v44 = vpop.eup %524 }
  0xb2   :  { %v104_v45 = vmul.f32 %v525_v44, %v80_v15 }
  0xb4   :  { %465 = vmatprep.subr.mxu0 %v104_v45 }
  0xb5   :  { %466 = vmatpush3.msra.mxu0 %v104_v45 }
  0xb8   :  { %v527_v46 = vpop.eup %526 }
  0xb9   :  { %v102_v47 = vmul.f32 %v527_v46, %v79_v23  ;;  %v329_v23 = vshrl.u32 %v29_v8, 7 }
  0xbb   :  { %467 = vmatprep.subr.mxu0 %v102_v47  ;;  %v330_v27 = vadd.s32 8, %v329_v23 }
  0xbc   :  { %v529_v48 = vpop.eup %528  ;;  %468 = vmatpush3.msra.mxu0 %v102_v47 }
  0xbd   :  { %v531_v49 = vpop.eup %530  ;;  %v98_v51 = vmul.f32 %v529_v48, %v77_v29  ;;  %v443_v29 = vld [vmem:[%s667_s2] ss:$0 sm:$0xff]  ;;  %s602_s2 = smov [#allocation5]  }
  0xbe   :  { %v100_v50 = vmul.f32 %v531_v49, %v78_v31  ;;  %vm337_vm2 = vcmp.eq.s32.totalorder %v330_v27, %v443_v29  ;;  %vm336_vm4 = vcmp.eq.s32.totalorder %v329_v23, %v443_v29  ;;  %s428_s29 = sshll.u32 %s602_s2, 4  ;;  %s429_s29 = int_to_ptr.vmem [resolvable:$true] %s428_s29 }
  0xbf   :  { %v445_v34 = vsel %vm337_vm2, 1.0, %v598_v55  ;;  %s568_s30 = scalar_lea.vmem %s429_s29, 64  ;;  %p573_p6 = scmp.lt.s32.totalorder %s429_s29, %s429_s29 }
  0xc0   :  { %469 = vmatprep.subr.mxu0 %v100_v50  ;;  %p569_p5 = scmp.ne.s32.totalorder %s429_s29, %s568_s30  ;;  %p574_p7 = scmp.lt.s32.totalorder %s568_s30, %s568_s30 }
  0xc1   :  { %470 = vmatpush3.msra.mxu0 %v100_v50 }
  0xc2   :  { %471 = vmatprep.subr.mxu0 %v98_v51  ;;  %p575_p8 = por %p574_p7, %p573_p6 }
  0xc3   :  { %472 = vmatpush3.msra.mxu0 %v98_v51 }
  0xc4   :  { %474 = vmatmul.mubr.msk.f32.vlgmr.msra.gmra.mxu0 %vm125_vm0, %v106_v52  ;;  %p576_p9 = pnand %p575_p8, %p569_p5 }
  0xc5   :  { %476 = vmatprep.mubr.msk.f32.mxu0 %vm125_vm0, %v107_v53 }
  0xc8   :  { %477 = vmatmul.mubr.msk.f32.gmra.mxu0 %vm125_vm0, %v108_v54 }
 0x184   :  { %v475_v60 = vpop.f32.mrf.mxu0 }
 0x185   :  { %v210_v62 = vadd.f32 %v475_v60, %v115_v59 }
 0x186   :  { %v204_v63 = vpop.f32.mrf.mxu0 }
 0x187   :  { %v224_v0 = vsub.f32 0.0, %v210_v62  ;;  %v205_v1 = vadd.f32 %v204_v63, %v111_v61 }
 0x188   :  { %v478_v2 = vpop.f32.mrf.mxu0 }
 0x189   :  { %v229_v4 = vmul.f32 1.442695, %v224_v0  ;;  %v223_v5 = vsub.f32 0.0, %v205_v1  ;;  %v220_v6 = vadd.f32 %v478_v2, %v123_v58 }
 0x18a   :  { %v214_v7 = vpop.f32.mrf.mxu0 }
 0x18b   :  { %v227_v9 = vmul.f32 1.442695, %v223_v5  ;;  %v226_v10 = vsub.f32 0.0, %v220_v6  ;;  %v215_v11 = vadd.f32 %v214_v7, %v119_v3  ;;  %532 = vpow2.f32 %v229_v4 }
 0x18d   :  { %v233_v12 = vmul.f32 1.442695, %v226_v10  ;;  %v225_v13 = vsub.f32 0.0, %v215_v11  ;;  %534 = vpow2.f32 %v227_v9 }
 0x18f   :  { %536 = vpow2.f32 %v233_v12  ;;  %v231_v14 = vmul.f32 1.442695, %v225_v13 }
 0x191   :  { %538 = vpow2.f32 %v231_v14 }
 0x198   :  { %v533_v15 = vpop.eup %532 }
 0x199   :  { %v236_v18 = vadd.f32 1.0, %v533_v15 }
 0x19a   :  { %v535_v16 = vpop.eup %534 }
 0x19b   :  { %v235_v21 = vadd.f32 1.0, %v535_v16 }
 0x19c   :  { %v537_v17 = vpop.eup %536 }
 0x19d   :  { %v238_v19 = vadd.f32 1.0, %v537_v17 }
 0x19e   :  { %v539_v20 = vpop.eup %538 }
 0x19f   :  { %540 = vrcp.f32 %v238_v19  ;;  %v237_v22 = vadd.f32 1.0, %v539_v20 }
 0x1a0   :  { %542 = vrcp.f32 %v236_v18 }
 0x1a1   :  { %544 = vrcp.f32 %v237_v22 }
 0x1a2   :  { %546 = vrcp.f32 %v235_v21 }
 0x1ac   :  { %v541_v24 = vpop.eup %540 }
 0x1ad   :  { %v543_v25 = vpop.eup %542  ;;  %v246_v26 = vmul.f32 %v541_v24, %v220_v6 }
 0x1ae   :  { %v545_v28 = vpop.eup %544  ;;  %v242_v32 = vmul.f32 %v543_v25, %v210_v62 }
 0x1af   :  { %v244_v30 = vmul.f32 %v545_v28, %v215_v11  ;;  %480 = vmatpush3.msra.mxu1 %v246_v26  ;;  %v547_v31 = vpop.eup %546 }
 0x1b0   :  { %481 = vmatprep.subr.mxu1 %v598_v55  ;;  %v240_v8 = vmul.f32 %v547_v31, %v205_v1 }
 0x1b1   :  { %482 = vmatpush3.msra.mxu1 %v244_v30 }
 0x1b2   :  { %483 = vmatprep.subr.mxu1 %v598_v55 }
 0x1b3   :  { %484 = vmatpush3.msra.mxu1 %v242_v32 }
 0x1b4   :  { %485 = vmatprep.subr.mxu1 %v598_v55 }
 0x1b5   :  { %486 = vmatpush3.msra.mxu1 %v240_v8 }
 0x1b6   :  { %488 = vmatmul.mubr.msk.f32.vlgmr.msra.gmra.mxu1 %vm125_vm0, %v248_v33  ;;  %490 = vmatprep.subr.mxu1 %v598_v55 }
 0x1b7   :  { %491 = vmatpush3.msk.msra.mxu1 %vm346_vm3, %v445_v34  ;;  %494 = vmatprep.mubr.msk.f32.mxu1 %vm599_vm1, %v598_v55 }
 0x1b8   :  { %492 = vmatprep.subr.mxu1 %v598_v55 }
 0x1b9   :  { %493 = vmatpush3.msk.msra.mxu1 %vm336_vm4, %v601_v35 }
 0x276   :  { %v324_v37 = vpop.f32.mrf.mxu1 }
 0x277   :  { %v325_v38 = vadd.f32 %v324_v37, %v253_v36 }
 0x278   :  { %v489_v39 = vpop.f32.mrf.mxu1 }
 0x279   :  { %495 = vmatmul.mubr.msk.f32.vlgmr.msra.gmra.mxu1 %vm342_vm5, %v325_v38 }
 0x339   :  { %v416_v40 = vpop.f32.mrf.mxu1 }
 0x33a   :  { %421 = vst.msk [vmem:[#allocation5] sm:$0xf] %vm420_vm6, %v416_v40 }
 0x33b   :  { %v496_v41 = vpop.f32.mrf.mxu1 }
 0x33c   :  { %579 = shalt.err (!%p576_p9)
}
 0x33d   :  { %431 = dma.vmem_to_hbm [thread:$0]  %s429_s29, 64, %s668_s3, [#allocation4]  }
 0x33e   :  { %590 = dma.done.wait [#allocation4], 64  }
 0x33f   :  { %591 = vsyncadd [#allocation4], 4294967232 }
 0x340   :  { %435 = vsyncpa [#allocation3], 1 }
 0x341   :  { %436 = vsyncpa [#allocation4], 1 }

</bundles_post_ra>
